<compile_context>
chip_gen: v5e
topology: v5e:2x2
jax: 0.10.0
libtpu: 0.0.40
codegen_flags: <defaults>
</compile_context>

<pallas_src>
import jax
import jax.numpy as jnp
from jax.experimental import pallas as pl
from jax.experimental.pallas import tpu as pltpu


def light_tc_kernel(ue_ref, ie_ref, te_ref,
                    wu_ref, wi_ref, wt_ref,
                    bu_ref, bi_ref, bt_ref,
                    o_ref):
    """One (TB, dim) batch tile: three Linears, u*i*t, row-sum, sigmoid."""
    # nn.Linear with pre-transposed ([in, out]) weights: y = x @ W_t + b.
    u = jnp.dot(ue_ref[...], wu_ref[...],
                preferred_element_type=jnp.float32) + bu_ref[...]
    i = jnp.dot(ie_ref[...], wi_ref[...],
                preferred_element_type=jnp.float32) + bi_ref[...]
    t = jnp.dot(te_ref[...], wt_ref[...],
                preferred_element_type=jnp.float32) + bt_ref[...]

    prod = u * i * t                                   # (TB, dim), f32
    s = jnp.sum(prod, axis=-1, keepdims=True)          # (TB, 1) -- no (1,B) transpose
    o_ref[...] = jax.nn.sigmoid(s).astype(o_ref.dtype)


def _pick_block_b(batch, dim, itemsize, target_bytes=8 << 20):
    """Largest batch tile whose double-buffered input working set ~= target."""
    rows = target_bytes // (6 * dim * itemsize)        # 3 inputs x 2 buffers
    rows = int(max(512, min(8192, rows)))
    rows = (rows // 8) * 8
    if batch < rows:
        rows = max(8, ((batch + 7) // 8) * 8)
    return rows


def light_tc_forward(user_idx, item_idx, time_idx, params):
    """LightTC forward: embedding row gather in XLA, hot path in Pallas."""
    dim = params["user_embed"].shape[1]
    emb_dtype = params["user_embed"].dtype
    B = user_idx.shape[0]

    tb = _pick_block_b(B, dim, jnp.dtype(emb_dtype).itemsize)
    b_pad = ((B + tb - 1) // tb) * tb
    if b_pad != B:
        pad = b_pad - B
        user_idx = jnp.pad(user_idx, (0, pad))
        item_idx = jnp.pad(item_idx, (0, pad))
        time_idx = jnp.pad(time_idx, (0, pad))

    # Row gathers stay in XLA (dim*2-byte rows are a bad fit for per-row DMA);
    # allow_input_fusion below lets XLA fuse them into the pallas_call inputs.
    ue = jnp.take(params["user_embed"], user_idx, axis=0)   # (b_pad, dim) bf16
    ie = jnp.take(params["item_embed"], item_idx, axis=0)
    te = jnp.take(params["time_embed"], time_idx, axis=0)

    # Scoped-VMEM budget: double-buffered inputs + resident weights/biases +
    # double-buffered output, with headroom; clamped for v7x (64 MiB physical).
    w_itemsize = jnp.dtype(params["user_w_t"].dtype).itemsize
    need = (3 * 2 * tb * dim * jnp.dtype(emb_dtype).itemsize
            + 3 * 2 * dim * dim * w_itemsize
            + 3 * 2 * dim * 4
            + 2 * tb * 4)
    vmem_limit = int(min(48 << 20, max(16 << 20, 2 * need)))

    emb_spec = pl.BlockSpec((tb, dim), lambda b: (b, 0))
    w_spec = pl.BlockSpec((dim, dim), lambda b: (0, 0))    # resident across grid
    bias_spec = pl.BlockSpec((1, dim), lambda b: (0, 0))   # resident across grid

    out = pl.pallas_call(
        light_tc_kernel,
        out_shape=jax.ShapeDtypeStruct((b_pad, 1), jnp.float32),
        grid=(b_pad // tb,),
        in_specs=[emb_spec, emb_spec, emb_spec,
                  w_spec, w_spec, w_spec,
                  bias_spec, bias_spec, bias_spec],
        out_specs=pl.BlockSpec((tb, 1), lambda b: (b, 0)),
        compiler_params=pltpu.CompilerParams(
            dimension_semantics=("parallel",),
            vmem_limit_bytes=vmem_limit,
            allow_input_fusion=[True, True, True,
                                False, False, False,
                                False, False, False],
        ),
    )(ue, ie, te,
      params["user_w_t"], params["item_w_t"], params["time_w_t"],
      params["user_b"], params["item_b"], params["time_b"])

    return out[:B, 0]   # (B,) predictions in (0, 1)


def init_raw_params(key, num_user, num_item, num_time, dim):
    """PyTorch-convention f32 parameters (weights [out, in], bias [dim])."""
    ks = jax.random.split(key, 9)
    scale = 0.1
    return {
        "user_embed": scale * jax.random.normal(ks[0], (num_user, dim), jnp.float32),
        "item_embed": scale * jax.random.normal(ks[1], (num_item, dim), jnp.float32),
        "time_embed": scale * jax.random.normal(ks[2], (num_time, dim), jnp.float32),
        "user_w": scale * jax.random.normal(ks[3], (dim, dim), jnp.float32),
        "user_b": scale * jax.random.normal(ks[4], (dim,), jnp.float32),
        "item_w": scale * jax.random.normal(ks[5], (dim, dim), jnp.float32),
        "item_b": scale * jax.random.normal(ks[6], (dim,), jnp.float32),
        "time_w": scale * jax.random.normal(ks[7], (dim, dim), jnp.float32),
        "time_b": scale * jax.random.normal(ks[8], (dim,), jnp.float32),
    }


def prepare_params(raw, emb_dtype=jnp.bfloat16):
    """One-time packing: bf16 tables/weights, weights transposed to [in, out]."""
    return {
        "user_embed": raw["user_embed"].astype(emb_dtype),
        "item_embed": raw["item_embed"].astype(emb_dtype),
        "time_embed": raw["time_embed"].astype(emb_dtype),
        "user_w_t": raw["user_w"].T.astype(emb_dtype),
        "item_w_t": raw["item_w"].T.astype(emb_dtype),
        "time_w_t": raw["time_w"].T.astype(emb_dtype),
        "user_b": raw["user_b"].reshape(1, -1).astype(jnp.float32),
        "item_b": raw["item_b"].reshape(1, -1).astype(jnp.float32),
        "time_b": raw["time_b"].reshape(1, -1).astype(jnp.float32),
    }


def reference_forward(user_idx, item_idx, time_idx, params):
    """Pure-JAX reference on the same prepared (bf16) params."""
    ue = jnp.take(params["user_embed"], user_idx, axis=0)
    ie = jnp.take(params["item_embed"], item_idx, axis=0)
    te = jnp.take(params["time_embed"], time_idx, axis=0)
    u = jnp.dot(ue, params["user_w_t"], preferred_element_type=jnp.float32) + params["user_b"]
    i = jnp.dot(ie, params["item_w_t"], preferred_element_type=jnp.float32) + params["item_b"]
    t = jnp.dot(te, params["time_w_t"], preferred_element_type=jnp.float32) + params["time_b"]
    return jax.nn.sigmoid(jnp.sum(u * i * t, axis=-1))


if __name__ == "__main__":
    num_user, num_item, num_time, dim = 10, 12, 6, 32

    key = jax.random.PRNGKey(0)
    k_params, k_data = jax.random.split(key)
    params = prepare_params(init_raw_params(k_params, num_user, num_item, num_time, dim))

    fwd = jax.jit(light_tc_forward)

    for batch in (8, 5):   # batch=5 exercises the batch-padding path
        ku, ki, kt = jax.random.split(jax.random.fold_in(k_data, batch), 3)
        user_idx = jax.random.randint(ku, (batch,), 0, num_user)
        item_idx = jax.random.randint(ki, (batch,), 0, num_item)
        time_idx = jax.random.randint(kt, (batch,), 0, num_time)

        pred = jax.block_until_ready(fwd(user_idx, item_idx, time_idx, params))
        ref = reference_forward(user_idx, item_idx, time_idx, params)
        assert pred.shape == (batch,)
        assert jnp.allclose(pred, ref, atol=1e-3, rtol=1e-3), (pred, ref)

    print("KERNEL_OK")
</pallas_src>

<mosaic_0001>
module attributes {stable_mosaic.version = 11 : i64} {
  func.func @light_tc_kernel(%arg0: i32, %arg1: memref<8x32xbf16, #tpu.memory_space<vmem>>, %arg2: memref<8x32xbf16, #tpu.memory_space<vmem>>, %arg3: memref<8x32xbf16, #tpu.memory_space<vmem>>, %arg4: memref<32x32xbf16, #tpu.memory_space<vmem>>, %arg5: memref<32x32xbf16, #tpu.memory_space<vmem>>, %arg6: memref<32x32xbf16, #tpu.memory_space<vmem>>, %arg7: memref<1x32xf32, #tpu.memory_space<vmem>>, %arg8: memref<1x32xf32, #tpu.memory_space<vmem>>, %arg9: memref<1x32xf32, #tpu.memory_space<vmem>>, %arg10: memref<8x1xf32, #tpu.memory_space<vmem>>) attributes {dimension_semantics = [#tpu.dimension_semantics<parallel>], iteration_bounds = array<i64: 1>, scalar_prefetch = 0 : i64, scratch_operands = 0 : i64, tpu.core_type = #tpu.core_type<tc>, window_params = [{transform_indices = @transform_0, window_bounds = array<i64: 8, 32>}, {transform_indices = @transform_1, window_bounds = array<i64: 8, 32>}, {transform_indices = @transform_2, window_bounds = array<i64: 8, 32>}, {pipeline_mode = #tpu.pipeline_mode<synchronous>, transform_indices = @transform_3, window_bounds = array<i64: 32, 32>}, {pipeline_mode = #tpu.pipeline_mode<synchronous>, transform_indices = @transform_4, window_bounds = array<i64: 32, 32>}, {pipeline_mode = #tpu.pipeline_mode<synchronous>, transform_indices = @transform_5, window_bounds = array<i64: 32, 32>}, {pipeline_mode = #tpu.pipeline_mode<synchronous>, transform_indices = @transform_6, window_bounds = array<i64: 1, 32>}, {pipeline_mode = #tpu.pipeline_mode<synchronous>, transform_indices = @transform_7, window_bounds = array<i64: 1, 32>}, {pipeline_mode = #tpu.pipeline_mode<synchronous>, transform_indices = @transform_8, window_bounds = array<i64: 1, 32>}, {transform_indices = @transform_9, window_bounds = array<i64: 8, 1>}]} {
    %c0 = arith.constant 0 : index
    %c0_0 = arith.constant 0 : index
    %0 = vector.load %arg1[%c0, %c0_0] : memref<8x32xbf16, #tpu.memory_space<vmem>>, vector<8x32xbf16>
    %c0_1 = arith.constant 0 : index
    %c0_2 = arith.constant 0 : index
    %1 = vector.load %arg4[%c0_1, %c0_2] : memref<32x32xbf16, #tpu.memory_space<vmem>>, vector<32x32xbf16>
    %cst = arith.constant dense<0.000000e+00> : vector<8x32xf32>
    %2 = tpu.matmul %0, %1, %cst {dimension_numbers = #tpu.dot_dimension_numbers<[1], [0], [0], [1], [0, 0, 1, 1], [], []>} : vector<8x32xbf16>, vector<32x32xbf16>, vector<8x32xf32> -> vector<8x32xf32>
    %c0_3 = arith.constant 0 : index
    %c0_4 = arith.constant 0 : index
    %3 = vector.load %arg7[%c0_3, %c0_4] : memref<1x32xf32, #tpu.memory_space<vmem>>, vector<1x32xf32>
    %4 = vector.broadcast %3 : vector<1x32xf32> to vector<8x32xf32>
    %5 = arith.addf %2, %4 : vector<8x32xf32>
    %c0_5 = arith.constant 0 : index
    %c0_6 = arith.constant 0 : index
    %6 = vector.load %arg2[%c0_5, %c0_6] : memref<8x32xbf16, #tpu.memory_space<vmem>>, vector<8x32xbf16>
    %c0_7 = arith.constant 0 : index
    %c0_8 = arith.constant 0 : index
    %7 = vector.load %arg5[%c0_7, %c0_8] : memref<32x32xbf16, #tpu.memory_space<vmem>>, vector<32x32xbf16>
    %cst_9 = arith.constant dense<0.000000e+00> : vector<8x32xf32>
    %8 = tpu.matmul %6, %7, %cst_9 {dimension_numbers = #tpu.dot_dimension_numbers<[1], [0], [0], [1], [0, 0, 1, 1], [], []>} : vector<8x32xbf16>, vector<32x32xbf16>, vector<8x32xf32> -> vector<8x32xf32>
    %c0_10 = arith.constant 0 : index
    %c0_11 = arith.constant 0 : index
    %9 = vector.load %arg8[%c0_10, %c0_11] : memref<1x32xf32, #tpu.memory_space<vmem>>, vector<1x32xf32>
    %10 = vector.broadcast %9 : vector<1x32xf32> to vector<8x32xf32>
    %11 = arith.addf %8, %10 : vector<8x32xf32>
    %c0_12 = arith.constant 0 : index
    %c0_13 = arith.constant 0 : index
    %12 = vector.load %arg3[%c0_12, %c0_13] : memref<8x32xbf16, #tpu.memory_space<vmem>>, vector<8x32xbf16>
    %c0_14 = arith.constant 0 : index
    %c0_15 = arith.constant 0 : index
    %13 = vector.load %arg6[%c0_14, %c0_15] : memref<32x32xbf16, #tpu.memory_space<vmem>>, vector<32x32xbf16>
    %cst_16 = arith.constant dense<0.000000e+00> : vector<8x32xf32>
    %14 = tpu.matmul %12, %13, %cst_16 {dimension_numbers = #tpu.dot_dimension_numbers<[1], [0], [0], [1], [0, 0, 1, 1], [], []>} : vector<8x32xbf16>, vector<32x32xbf16>, vector<8x32xf32> -> vector<8x32xf32>
    %c0_17 = arith.constant 0 : index
    %c0_18 = arith.constant 0 : index
    %15 = vector.load %arg9[%c0_17, %c0_18] : memref<1x32xf32, #tpu.memory_space<vmem>>, vector<1x32xf32>
    %16 = vector.broadcast %15 : vector<1x32xf32> to vector<8x32xf32>
    %17 = arith.addf %14, %16 : vector<8x32xf32>
    %18 = arith.mulf %5, %11 : vector<8x32xf32>
    %19 = arith.mulf %18, %17 : vector<8x32xf32>
    %cst_19 = arith.constant dense<0.000000e+00> : vector<8xf32>
    %20 = vector.multi_reduction <add>, %19, %cst_19 [1] : vector<8x32xf32> to vector<8xf32>
    %21 = vector.shape_cast %20 : vector<8xf32> to vector<8x1xf32>
    %22 = arith.negf %21 : vector<8x1xf32>
    %23 = math.exp %22 : vector<8x1xf32>
    %cst_20 = arith.constant 1.000000e+00 : f32
    %24 = vector.broadcast %cst_20 : f32 to vector<8x1xf32>
    %25 = arith.addf %24, %23 : vector<8x1xf32>
    %26 = arith.divf %24, %25 : vector<8x1xf32>
    %c0_21 = arith.constant 0 : index
    %c0_22 = arith.constant 0 : index
    %27 = vector.load %arg10[%c0_21, %c0_22] : memref<8x1xf32, #tpu.memory_space<vmem>>, vector<8x1xf32>
    tpu.vector_store %arg10[%c0_21, %c0_22], %26 {strides = array<i32>} : memref<8x1xf32, #tpu.memory_space<vmem>>, vector<8x1xf32>,
    return
  }
  func.func @transform_0(%arg0: i32) -> (i32, i32) {
    %c0_i32 = arith.constant 0 : i32
    %c0_i32_0 = arith.constant 0 : i32
    return %arg0, %c0_i32 : i32, i32
  }
  func.func @transform_1(%arg0: i32) -> (i32, i32) {
    %c0_i32 = arith.constant 0 : i32
    %c0_i32_0 = arith.constant 0 : i32
    return %arg0, %c0_i32 : i32, i32
  }
  func.func @transform_2(%arg0: i32) -> (i32, i32) {
    %c0_i32 = arith.constant 0 : i32
    %c0_i32_0 = arith.constant 0 : i32
    return %arg0, %c0_i32 : i32, i32
  }
  func.func @transform_3(%arg0: i32) -> (i32, i32) {
    %c0_i32 = arith.constant 0 : i32
    %c0_i32_0 = arith.constant 0 : i32
    %c0_i32_1 = arith.constant 0 : i32
    return %c0_i32, %c0_i32_0 : i32, i32
  }
  func.func @transform_4(%arg0: i32) -> (i32, i32) {
    %c0_i32 = arith.constant 0 : i32
    %c0_i32_0 = arith.constant 0 : i32
    %c0_i32_1 = arith.constant 0 : i32
    return %c0_i32, %c0_i32_0 : i32, i32
  }
  func.func @transform_5(%arg0: i32) -> (i32, i32) {
    %c0_i32 = arith.constant 0 : i32
    %c0_i32_0 = arith.constant 0 : i32
    %c0_i32_1 = arith.constant 0 : i32
    return %c0_i32, %c0_i32_0 : i32, i32
  }
  func.func @transform_6(%arg0: i32) -> (i32, i32) {
    %c0_i32 = arith.constant 0 : i32
    %c0_i32_0 = arith.constant 0 : i32
    %c0_i32_1 = arith.constant 0 : i32
    return %c0_i32, %c0_i32_0 : i32, i32
  }
  func.func @transform_7(%arg0: i32) -> (i32, i32) {
    %c0_i32 = arith.constant 0 : i32
    %c0_i32_0 = arith.constant 0 : i32
    %c0_i32_1 = arith.constant 0 : i32
    return %c0_i32, %c0_i32_0 : i32, i32
  }
  func.func @transform_8(%arg0: i32) -> (i32, i32) {
    %c0_i32 = arith.constant 0 : i32
    %c0_i32_0 = arith.constant 0 : i32
    %c0_i32_1 = arith.constant 0 : i32
    return %c0_i32, %c0_i32_0 : i32, i32
  }
  func.func @transform_9(%arg0: i32) -> (i32, i32) {
    %c0_i32 = arith.constant 0 : i32
    %c0_i32_0 = arith.constant 0 : i32
    return %arg0, %c0_i32 : i32, i32
  }
}

</mosaic_0001>

<bundles_post_ra>
// kernel: light_tc_forward.2
= control target key start
LH: loop header
LB: loop body
LE: loop exit
PB: predicated region body
PF: predicated region fallthrough
CT: control target
= control target key end

     0   :  { %s434_s0 = inlined_call_operand.vmem [shape: bf16[32,32], index: 0, kind: input, shape index: {}]   ;;  %s435_s1 = inlined_call_operand.vmem [shape: bf16[32,32], index: 1, kind: input, shape index: {}]   ;;  %s436_s2 = inlined_call_operand.vmem [shape: bf16[32,32], index: 2, kind: input, shape index: {}]   ;;  %s437_s3 = inlined_call_operand.vmem [shape: f32[1,32], index: 3, kind: input, shape index: {}]   ;;  %s438_s4 = inlined_call_operand.vmem [shape: f32[1,32], index: 4, kind: input, shape index: {}]   ;;  %s439_s5 = inlined_call_operand.vmem [shape: f32[1,32], index: 5, kind: input, shape index: {}]   ;;  %s440_s6 = inlined_call_operand.vmem [shape: bf16[8,32], index: 6, kind: input, shape index: {}]   ;;  %s441_s7 = inlined_call_operand.vmem [shape: bf16[8,32], index: 7, kind: input, shape index: {}]   ;;  %s442_s8 = inlined_call_operand.vmem [shape: bf16[8,32], index: 8, kind: input, shape index: {}]   ;;  %s443_s9 = inlined_call_operand.vmem [shape: pred[8], index: 9, kind: input, shape index: {}]   ;;  %s444_s10 = inlined_call_operand.vmem [shape: pred[8], index: 10, kind: input, shape index: {}]   ;;  %s445_s11 = inlined_call_operand.vmem [shape: pred[8], index: 11, kind: input, shape index: {}]   ;;  %s446_s12 = inlined_call_operand.<no memory space> [shape: bf16[], index: 12, kind: input, shape index: {}]   ;;  %s447_s13 = inlined_call_operand.vmem [shape: f32[8,1], index: 13, kind: output, shape index: {}]  }
   0x1   :  { %v18_v0 = vstv %s446_s12 }
   0x2   :  { %v19_v1 = vunpack.i.l.bf16 %v18_v0 }
   0x3   :  { %v64_v2 = vlaneseq  ;;  %v82_v4 = vld [vmem:[%s444_s10] ss:$0 sm:$0xff]  ;;  %v297_v10 = vld [vmem:[%s435_s1 + $0x8] sm:$0xff]  ;;  %vm145_vm3 = vcmask 261120   ;;  %vm260_vm6 = vcmask 7168  }
   0x4   :  { %v104_v5 = vld [vmem:[%s443_s9] ss:$0 sm:$0xff]  ;;  %v85_v6 = vand.u32 255, %v82_v4  ;;  %v299_v11 = vld [vmem:[%s436_s2 + $0x8] sm:$0xff]  ;;  %192 = vmatpush.bf16.msra.mxu1 %v297_v10 }
   0x5   :  { %v65_v3 = vshrl.u32 %v64_v2, 7  ;;  %v107_v7 = vand.u32 255, %v104_v5  ;;  %v60_v8 = vld [vmem:[%s445_s11] ss:$0 sm:$0xff]  ;;  %229 = vmatpush.bf16.msra.mxu2 %v299_v11  ;;  %v295_v14 = vld [vmem:[%s434_s0 + $0x8] sm:$0xff] }
   0x6   :  { %v63_v9 = vand.u32 255, %v60_v8  ;;  %v296_v12 = vld [vmem:[%s435_s1] sm:$0xff]  ;;  %155 = vmatpush.bf16.msra.mxu0 %v295_v14 }
   0x7   :  { %301 = vset.pattern.permute.xlu1 %v65_v3  ;;  %300 = vset.pattern.permute.xlu0 %v65_v3  ;;  %v298_v13 = vld [vmem:[%s436_s2] sm:$0xff] }
   0x8   :  { %193 = vmatpush.bf16.msra.mxu1 %v296_v12  ;;  %v294_v15 = vld [vmem:[%s434_s0] sm:$0xff] }
   0x9   :  { %230 = vmatpush.bf16.msra.mxu2 %v298_v13  ;;  %v79_v16 = vld [vmem:[%s441_s7] sm:$0xf] }
   0xa   :  { %156 = vmatpush.bf16.msra.mxu0 %v294_v15  ;;  %v101_v17 = vld [vmem:[%s440_s6] sm:$0xf]  ;;  %v80_v18 = vunpack.c.l.bf16 %v79_v16 }
   0xb   :  { %v102_v19 = vunpack.c.l.bf16 %v101_v17  ;;  %v57_v26 = vld [vmem:[%s442_s8] sm:$0xf] }
   0xc   :  { %v58_v27 = vunpack.c.l.bf16 %v57_v26  ;;  %v302_v35 = vld [vmem:[%s438_s4] ss:$0 sm:$0xff] }
   0xd   :  { %v304_v36 = vld [vmem:[%s437_s3] ss:$0 sm:$0xff] }
   0xe   :  { %v303_v38 = vld [vmem:[%s439_s5] ss:$0 sm:$0xff] }
   0xf   :  { %90 = vperm.xlu1 %301, %v85_v6   ;;  %112 = vperm.xlu0 %300, %v107_v7  }
  0x17   :  { %68 = vperm.xlu0 %300, %v63_v9  }
  0x81   :  { %v91_v20 = vpop.permute.xlu1 %90  ;;  %v113_v21 = vpop.permute.xlu0 %112 }
  0x82   :  { %vm94_vm0 = vcmp.ne.s32.totalorder %v91_v20, 0  ;;  %vm116_vm1 = vcmp.ne.s32.totalorder %v113_v21, 0 }
  0x83   :  { %v95_v22 = vsel %vm94_vm0, %v80_v18, %v19_v1  ;;  %v117_v23 = vsel %vm116_vm1, %v102_v19, %v19_v1 }
  0x84   :  { %v97_v24 = vpack.c.bf16 0.0, %v95_v22  ;;  %v119_v25 = vpack.c.bf16 0.0, %v117_v23 }
  0x86   :  { %100 = vst [vmem:[#allocation3] sm:$0xf] %v97_v24 }
  0x87   :  { %122 = vst [vmem:[#allocation4] sm:$0xf] %v119_v25 }
  0x89   :  { %v69_v28 = vpop.permute.xlu0 %68 }
  0x8a   :  { %vm72_vm2 = vcmp.ne.s32.totalorder %v69_v28, 0 }
  0x8b   :  { %v73_v29 = vsel %vm72_vm2, %v58_v27, %v19_v1 }
  0x8c   :  { %v75_v30 = vpack.c.bf16 0.0, %v73_v29 }
  0x8d   :  { %v162_v31 = vld [vmem:[#allocation3] sm:$0xf] }
  0x8e   :  { %78 = vst [vmem:[#allocation2] sm:$0xf] %v75_v30  ;;  %283 = vmatmul.msk.bf16.vlgmr.msra.gmra.mxu1 %vm145_vm3, %v162_v31  ;;  %v199_v32 = vld [vmem:[#allocation4] sm:$0xf] }
  0x8f   :  { %292 = vmatmul.msk.bf16.vlgmr.msra.gmra.mxu2 %vm145_vm3, %v199_v32 }
  0x95   :  { %v124_v33 = vld [vmem:[#allocation2] sm:$0xf] }
  0x96   :  { %274 = vmatmul.msk.bf16.vlgmr.msra.gmra.mxu0 %vm145_vm3, %v124_v33 }
 0x10b   :  { %v195_v34 = vpop.f32.mrf.mxu1 }
 0x10c   :  { %v196_v37 = vadd.f32 %v302_v35, %v195_v34 }
 0x112   :  { %v232_v39 = vpop.f32.mrf.mxu2 }
 0x113   :  { %v158_v40 = vpop.f32.mrf.mxu0  ;;  %v197_v41 = vpop.f32.mrf.mxu1  ;;  %v233_v43 = vadd.f32 %v303_v38, %v232_v39 }
 0x114   :  { %v159_v42 = vadd.f32 %v304_v36, %v158_v40 }
 0x116   :  { %v236_v44 = vmul.f32 %v196_v37, %v159_v42 }
 0x118   :  { %v237_v45 = vmul.f32 %v236_v44, %v233_v43 }
 0x11a   :  { %v234_v46 = vpop.f32.mrf.mxu2  ;;  %v238_v47 = vsel %vm145_vm3, %v237_v45, 0.0 }
 0x11b   :  { %v160_v48 = vpop.f32.mrf.mxu0  ;;  %239 = vadd.xlane.f32.xlu1 %v238_v47 }
 0x18e   :  { %v240_v49 = vpop.xlane.xlu1 %239 }
 0x18f   :  { %v293_v50 = vmul.f32 -1.442695, %v240_v49 }
 0x191   :  { %305 = vpow2.f32 %v293_v50 }
 0x197   :  { %v306_v51 = vpop.eup %305 }
 0x198   :  { %v244_v52 = vadd.f32 1.0, %v306_v51 }
 0x19a   :  { %307 = vrcp.f32 %v244_v52  ;;  %v256_v56 = vand.u32 2147483648, %v244_v52  ;;  %v254_v58 = vand.u32 2147483647, %v244_v52  ;;  %vm250_vm5 = vweird.f32 %v244_v52 }
 0x19c   :  { %v257_v60 = vor.u32 1.1754944e-38, %v256_v56  ;;  %vm255_vm8 = vcmp.eq.f32.partialorder %v254_v58, 8.507059e+37 }
 0x1a0   :  { %v308_v53 = vpop.eup %307 }
 0x1a1   :  { %v246_v54 = vmul.f32 %v308_v53, %v244_v52  ;;  %vm251_vm4 = vweird.f32 %v308_v53 }
 0x1a2   :  { %vm252_vm7 = vmor %vm250_vm5, %vm251_vm4 }
 0x1a3   :  { %v247_v55 = vsub.f32 1.0, %v246_v54 }
 0x1a5   :  { %v248_v57 = vmul.f32 %v308_v53, %v247_v55 }
 0x1a7   :  { %v249_v59 = vadd.f32 %v308_v53, %v248_v57 }
 0x1a9   :  { %v253_v61 = vsel %vm252_vm7, %v308_v53, %v249_v59 }
 0x1aa   :  { %v258_v62 = vsel %vm255_vm8, %v257_v60, %v253_v61 }
 0x1ab   :  { %261 = vst.msk [vmem:[%s447_s13] sm:$0xff] %vm260_vm6, %v258_v62 }

</bundles_post_ra>
